<compile_context>
chip_gen: v7x
topology: tpu7x:2x2x1
jax: 0.10.0
libtpu: 0.0.40
codegen_flags: <defaults>
</compile_context>

<pallas_src>
import jax
import jax.numpy as jnp
from jax.experimental import pallas as pl
from jax.experimental.pallas import tpu as pltpu


def gru4rec_kernel(tgt_ref,                       # SMEM (B,) int32 scalar prefetch
                   x_ref, mask_ref, h_ref,        # (B,C) (B,1) (B,H) f32
                   w_gates_ref, b_gates_ref,      # (C+H,4H) bf16, (1,4H) f32
                   w_row_ref, b_sel_ref,          # (1,1,H) bf16 gathered row, (1,B) f32
                   logit_ref, h_out_ref,          # (B,B) f32, (B,H) f32
                   h_scratch, wsel_scratch):      # VMEM (B,H) f32, (B,H) f32
    i = pl.program_id(0)
    last = pl.num_programs(0) - 1
    H = h_ref.shape[-1]

    # ---- step 0: the full fused GRU cell update (single MXU push), kept resident.
    @pl.when(i == 0)
    def _():
        x = x_ref[...] * mask_ref[...]            # unscaled input dropout (as in module)
        h = h_ref[...]
        xh = jnp.concatenate([x, h], axis=-1).astype(jnp.bfloat16)     # (B, C+H)
        g = jnp.dot(xh, w_gates_ref[...],
                    preferred_element_type=jnp.float32) + b_gates_ref[...]  # (B, 4H)
        r = jax.nn.sigmoid(g[:, 0:H])                                  # lane-aligned slices
        z = jax.nn.sigmoid(g[:, H:2 * H])
        n = jnp.tanh(g[:, 2 * H:3 * H] + r * g[:, 3 * H:4 * H])
        h_new = (1.0 - z) * n + z * h
        h_scratch[...] = h_new
        h_out_ref[...] = h_new

    # ---- every step: deposit the gathered h2o.weight row (already DMA'd into
    # VMEM by the target-indexed BlockSpec) into the (B, H) selection scratch.
    wsel_scratch[pl.ds(i, 1), :] = w_row_ref[0].astype(jnp.float32)

    # ---- last step: sampled logits = tanh(h_new @ W_sel.T + b_ho[target]).
    @pl.when(i == last)
    def _():
        hb = h_scratch[...].astype(jnp.bfloat16)
        wb = wsel_scratch[...].astype(jnp.bfloat16)
        scores = jax.lax.dot_general(hb, wb, (((1,), (1,)), ((), ())),
                                     preferred_element_type=jnp.float32)   # (B, B)
        logit_ref[...] = jnp.tanh(scores + b_sel_ref[...])


@jax.jit
def gru4rec_forward(embedded, target, hidden, w_gates, b_gates, w_ho_rows, b_ho,
                    dropout_mask):
    """embedded (B,C) f32, target (B,) i32, hidden (1,B,H) f32 -> (logit (B,B), hidden (1,B,H))."""
    B, C = embedded.shape
    H = hidden.shape[-1]
    target = target.astype(jnp.int32)
    # Tiny glue: gather the B sampled output biases (B floats) outside the kernel.
    b_sel = jnp.take(b_ho[0], target)[None, :].astype(jnp.float32)      # (1, B)

    grid_spec = pltpu.PrefetchScalarGridSpec(
        num_scalar_prefetch=1,
        grid=(B,),
        in_specs=[
            pl.BlockSpec((B, C), lambda i, tgt: (0, 0)),                # x       (resident)
            pl.BlockSpec((B, 1), lambda i, tgt: (0, 0)),                # mask    (resident)
            pl.BlockSpec((B, H), lambda i, tgt: (0, 0)),                # h0      (resident)
            pl.BlockSpec((C + H, 4 * H), lambda i, tgt: (0, 0)),        # fused gate W
            pl.BlockSpec((1, 4 * H), lambda i, tgt: (0, 0)),            # fused gate b
            pl.BlockSpec((1, 1, H), lambda i, tgt: (tgt[i], 0, 0)),     # gathered w_ho row
            pl.BlockSpec((1, B), lambda i, tgt: (0, 0)),                # gathered b_ho
        ],
        out_specs=(
            pl.BlockSpec((B, B), lambda i, tgt: (0, 0)),                # logit (resident)
            pl.BlockSpec((B, H), lambda i, tgt: (0, 0)),                # h_out (resident)
        ),
        scratch_shapes=[
            pltpu.VMEM((B, H), jnp.float32),                            # h_new
            pltpu.VMEM((B, H), jnp.float32),                            # gathered W rows
        ],
    )

    logit, h_new = pl.pallas_call(
        gru4rec_kernel,
        out_shape=(jax.ShapeDtypeStruct((B, B), jnp.float32),
                   jax.ShapeDtypeStruct((B, H), jnp.float32)),
        grid_spec=grid_spec,
        compiler_params=pltpu.CompilerParams(dimension_semantics=("arbitrary",)),
    )(target, embedded, dropout_mask, hidden[0],
      w_gates, b_gates, w_ho_rows, b_sel)

    return logit, h_new[None]                                           # (1, B, H)


def init_params(key, input_size, hidden_size, output_size):
    """Raw parameters matching PyTorch nn.GRU / nn.Linear (weights pre-transposed, f32)."""
    ks = jax.random.split(key, 6)
    s = 1.0 / jnp.sqrt(hidden_size)
    u = lambda k, shape: jax.random.uniform(k, shape, jnp.float32, -s, s)
    return {
        "w_ih": u(ks[0], (input_size, 3 * hidden_size)),    # weight_ih_l0.T, gates [r|z|n]
        "w_hh": u(ks[1], (hidden_size, 3 * hidden_size)),   # weight_hh_l0.T
        "b_ih": u(ks[2], (1, 3 * hidden_size)),
        "b_hh": u(ks[3], (1, 3 * hidden_size)),
        "w_ho": u(ks[4], (hidden_size, output_size)),       # h2o.weight.T
        "b_ho": u(ks[5], (1, output_size)),
    }


def pack_params(raw, input_size, hidden_size, output_size):
    """Build the fused / kernel-friendly parameter layout."""
    C, H, O = input_size, hidden_size, output_size
    w_ih, w_hh = raw["w_ih"], raw["w_hh"]
    # Fused gate weight (C+H, 4H) with column blocks [r | z | i_n | h_n].
    top = jnp.concatenate([w_ih[:, 0:H], w_ih[:, H:2 * H], w_ih[:, 2 * H:3 * H],
                           jnp.zeros((C, H), jnp.float32)], axis=1)
    bot = jnp.concatenate([w_hh[:, 0:H], w_hh[:, H:2 * H],
                           jnp.zeros((H, H), jnp.float32), w_hh[:, 2 * H:3 * H]], axis=1)
    w_gates = jnp.concatenate([top, bot], axis=0).astype(jnp.bfloat16)          # (C+H, 4H)
    b_gates = jnp.concatenate([raw["b_ih"][:, 0:2 * H] + raw["b_hh"][:, 0:2 * H],
                               raw["b_ih"][:, 2 * H:3 * H],
                               raw["b_hh"][:, 2 * H:3 * H]], axis=1)            # (1, 4H) f32
    # h2o.weight rows, (O, 1, H) bf16, row-gatherable by the target BlockSpec.
    w_ho_rows = raw["w_ho"].T.reshape(O, 1, H).astype(jnp.bfloat16)
    return w_gates, b_gates, w_ho_rows


def reference_forward(embedded, target, hidden, raw, mask):
    """Pure-JAX f32 reference of the PyTorch forward (training mode, num_layers=1, seq_len=1)."""
    x = embedded * mask
    h = hidden[0]
    H = h.shape[-1]
    gi = x @ raw["w_ih"] + raw["b_ih"]
    gh = h @ raw["w_hh"] + raw["b_hh"]
    r = jax.nn.sigmoid(gi[:, :H] + gh[:, :H])
    z = jax.nn.sigmoid(gi[:, H:2 * H] + gh[:, H:2 * H])
    n = jnp.tanh(gi[:, 2 * H:] + r * gh[:, 2 * H:])
    h_new = (1.0 - z) * n + z * h
    logit = jnp.tanh(h_new @ raw["w_ho"] + raw["b_ho"])
    return logit[:, target], h_new[None]


if __name__ == "__main__":
    B, C, H, O = 8, 128, 128, 512      # batch, input_size, hidden_size, output_size (vocab)
    dropout_input = 0.25
    key = jax.random.PRNGKey(0)
    kp, kx, kh, kt, km = jax.random.split(key, 5)

    raw = init_params(kp, C, H, O)
    w_gates, b_gates, w_ho_rows = pack_params(raw, C, H, O)

    embedded = jax.random.normal(kx, (B, C), jnp.float32)
    hidden = jnp.tanh(jax.random.normal(kh, (1, B, H), jnp.float32))   # mid-session state
    target = jax.random.randint(kt, (B,), 0, O, jnp.int32)
    # training-mode input dropout mask: Bernoulli(1 - dropout_input) per row, (B, 1), unscaled
    dropout_mask = jax.random.bernoulli(km, 1.0 - dropout_input, (B, 1)).astype(jnp.float32)

    logit, h_new = gru4rec_forward(embedded, target, hidden,
                                   w_gates, b_gates, w_ho_rows, raw["b_ho"], dropout_mask)
    jax.block_until_ready((logit, h_new))

    ref_logit, ref_h = reference_forward(embedded, target, hidden, raw, dropout_mask)
    assert logit.shape == (B, B) and h_new.shape == (1, B, H)
    # bf16 MXU inputs (f32 accumulation) vs f32 reference: outputs are tanh/sigmoid
    # bounded, observed error ~1e-3, so 2e-2 is a safe-but-meaningful tolerance.
    assert jnp.allclose(logit, ref_logit, atol=2e-2, rtol=2e-2), \
        float(jnp.max(jnp.abs(logit - ref_logit)))
    assert jnp.allclose(h_new, ref_h, atol=2e-2, rtol=2e-2), \
        float(jnp.max(jnp.abs(h_new - ref_h)))

    print("KERNEL_OK")
</pallas_src>

<mosaic_0001>
module attributes {stable_mosaic.version = 11 : i64} {
  func.func @gru4rec_kernel(%arg0: i32, %arg1: memref<8xi32, #tpu.memory_space<smem>>, %arg2: memref<8x128xf32, #tpu.memory_space<vmem>>, %arg3: memref<8x1xf32, #tpu.memory_space<vmem>>, %arg4: memref<8x128xf32, #tpu.memory_space<vmem>>, %arg5: memref<256x512xbf16, #tpu.memory_space<vmem>>, %arg6: memref<1x512xf32, #tpu.memory_space<vmem>>, %arg7: memref<1x1x128xbf16, #tpu.memory_space<vmem>>, %arg8: memref<1x8xf32, #tpu.memory_space<vmem>>, %arg9: memref<8x8xf32, #tpu.memory_space<vmem>>, %arg10: memref<8x128xf32, #tpu.memory_space<vmem>>, %arg11: memref<8x128xf32, #tpu.memory_space<vmem>>, %arg12: memref<8x128xf32, #tpu.memory_space<vmem>>) attributes {dimension_semantics = [#tpu.dimension_semantics<arbitrary>], iteration_bounds = array<i64: 8>, scalar_prefetch = 1 : i64, scratch_operands = 2 : i64, tpu.core_type = #tpu.core_type<tc>, window_params = [{pipeline_mode = #tpu.pipeline_mode<synchronous>, transform_indices = @transform_0, window_bounds = array<i64: 8, 128>}, {pipeline_mode = #tpu.pipeline_mode<synchronous>, transform_indices = @transform_1, window_bounds = array<i64: 8, 1>}, {pipeline_mode = #tpu.pipeline_mode<synchronous>, transform_indices = @transform_2, window_bounds = array<i64: 8, 128>}, {pipeline_mode = #tpu.pipeline_mode<synchronous>, transform_indices = @transform_3, window_bounds = array<i64: 256, 512>}, {pipeline_mode = #tpu.pipeline_mode<synchronous>, transform_indices = @transform_4, window_bounds = array<i64: 1, 512>}, {transform_indices = @transform_5, window_bounds = array<i64: 1, 1, 128>}, {pipeline_mode = #tpu.pipeline_mode<synchronous>, transform_indices = @transform_6, window_bounds = array<i64: 1, 8>}, {pipeline_mode = #tpu.pipeline_mode<synchronous>, transform_indices = @transform_7, window_bounds = array<i64: 8, 8>}, {pipeline_mode = #tpu.pipeline_mode<synchronous>, transform_indices = @transform_8, window_bounds = array<i64: 8, 128>}]} {
    %c0_i32 = arith.constant 0 : i32
    %0 = arith.cmpi eq, %arg0, %c0_i32 : i32
    %1 = arith.extui %0 : i1 to i32
    %c0_i32_0 = arith.constant 0 : i32
    %2 = arith.cmpi ne, %1, %c0_i32_0 : i32
    scf.if %2 {
      %c0_5 = arith.constant 0 : index
      %c0_6 = arith.constant 0 : index
      %11 = vector.load %arg2[%c0_5, %c0_6] : memref<8x128xf32, #tpu.memory_space<vmem>>, vector<8x128xf32>
      %c0_7 = arith.constant 0 : index
      %c0_8 = arith.constant 0 : index
      %12 = vector.load %arg3[%c0_7, %c0_8] : memref<8x1xf32, #tpu.memory_space<vmem>>, vector<8x1xf32>
      %13 = vector.broadcast %12 : vector<8x1xf32> to vector<8x128xf32>
      %14 = arith.mulf %11, %13 : vector<8x128xf32>
      %c0_9 = arith.constant 0 : index
      %c0_10 = arith.constant 0 : index
      %15 = vector.load %arg4[%c0_9, %c0_10] : memref<8x128xf32, #tpu.memory_space<vmem>>, vector<8x128xf32>
      %16 = tpu.concatenate %14, %15 in 1 : vector<8x128xf32>, vector<8x128xf32> -> vector<8x256xf32>
      %17 = arith.truncf %16 : vector<8x256xf32> to vector<8x256xbf16>
      %c0_11 = arith.constant 0 : index
      %c0_12 = arith.constant 0 : index
      %18 = vector.load %arg5[%c0_11, %c0_12] : memref<256x512xbf16, #tpu.memory_space<vmem>>, vector<256x512xbf16>
      %cst = arith.constant dense<0.000000e+00> : vector<8x512xf32>
      %19 = tpu.matmul %17, %18, %cst {dimension_numbers = #tpu.dot_dimension_numbers<[1], [0], [0], [1], [0, 0, 1, 1], [], []>} : vector<8x256xbf16>, vector<256x512xbf16>, vector<8x512xf32> -> vector<8x512xf32>
      %c0_13 = arith.constant 0 : index
      %c0_14 = arith.constant 0 : index
      %20 = vector.load %arg6[%c0_13, %c0_14] : memref<1x512xf32, #tpu.memory_space<vmem>>, vector<1x512xf32>
      %21 = vector.broadcast %20 : vector<1x512xf32> to vector<8x512xf32>
      %22 = arith.addf %19, %21 : vector<8x512xf32>
      %23 = vector.extract_strided_slice %22 {offsets = [0, 0], sizes = [8, 128], strides = [1, 1]} : vector<8x512xf32> to vector<8x128xf32>
      %24 = arith.negf %23 : vector<8x128xf32>
      %25 = math.exp %24 : vector<8x128xf32>
      %cst_15 = arith.constant 1.000000e+00 : f32
      %26 = vector.broadcast %cst_15 : f32 to vector<8x128xf32>
      %27 = arith.addf %26, %25 : vector<8x128xf32>
      %28 = arith.divf %26, %27 : vector<8x128xf32>
      %29 = vector.extract_strided_slice %22 {offsets = [0, 128], sizes = [8, 128], strides = [1, 1]} : vector<8x512xf32> to vector<8x128xf32>
      %30 = arith.negf %29 : vector<8x128xf32>
      %31 = math.exp %30 : vector<8x128xf32>
      %cst_16 = arith.constant 1.000000e+00 : f32
      %32 = vector.broadcast %cst_16 : f32 to vector<8x128xf32>
      %33 = arith.addf %32, %31 : vector<8x128xf32>
      %34 = arith.divf %32, %33 : vector<8x128xf32>
      %35 = vector.extract_strided_slice %22 {offsets = [0, 256], sizes = [8, 128], strides = [1, 1]} : vector<8x512xf32> to vector<8x128xf32>
      %36 = vector.extract_strided_slice %22 {offsets = [0, 384], sizes = [8, 128], strides = [1, 1]} : vector<8x512xf32> to vector<8x128xf32>
      %37 = arith.mulf %28, %36 : vector<8x128xf32>
      %38 = arith.addf %35, %37 : vector<8x128xf32>
      %39 = math.tanh %38 : vector<8x128xf32>
      %cst_17 = arith.constant 1.000000e+00 : f32
      %40 = vector.broadcast %cst_17 : f32 to vector<8x128xf32>
      %41 = arith.subf %40, %34 : vector<8x128xf32>
      %42 = arith.mulf %41, %39 : vector<8x128xf32>
      %43 = arith.mulf %34, %15 : vector<8x128xf32>
      %44 = arith.addf %42, %43 : vector<8x128xf32>
      %c0_18 = arith.constant 0 : index
      %c0_19 = arith.constant 0 : index
      %45 = vector.load %arg11[%c0_18, %c0_19] : memref<8x128xf32, #tpu.memory_space<vmem>>, vector<8x128xf32>
      tpu.vector_store %arg11[%c0_18, %c0_19], %44 {strides = array<i32>} : memref<8x128xf32, #tpu.memory_space<vmem>>, vector<8x128xf32>,
      %c0_20 = arith.constant 0 : index
      %c0_21 = arith.constant 0 : index
      %46 = vector.load %arg10[%c0_20, %c0_21] : memref<8x128xf32, #tpu.memory_space<vmem>>, vector<8x128xf32>
      tpu.vector_store %arg10[%c0_20, %c0_21], %44 {strides = array<i32>} : memref<8x128xf32, #tpu.memory_space<vmem>>, vector<8x128xf32>,
    } else {
    }
    %c0 = arith.constant 0 : index
    %c0_1 = arith.constant 0 : index
    %c0_2 = arith.constant 0 : index
    %3 = vector.load %arg7[%c0, %c0_1, %c0_2] : memref<1x1x128xbf16, #tpu.memory_space<vmem>>, vector<1x1x128xbf16>
    %4 = vector.shape_cast %3 : vector<1x1x128xbf16> to vector<1x128xbf16>
    %5 = arith.extf %4 : vector<1x128xbf16> to vector<1x128xf32>
    %6 = arith.index_cast %arg0 : i32 to index
    %c0_3 = arith.constant 0 : index
    %7 = vector.load %arg12[%6, %c0_3] : memref<8x128xf32, #tpu.memory_space<vmem>>, vector<1x128xf32>
    tpu.vector_store %arg12[%6, %c0_3], %5 {strides = array<i32>} : memref<8x128xf32, #tpu.memory_space<vmem>>, vector<1x128xf32>,
    %c7_i32 = arith.constant 7 : i32
    %8 = arith.cmpi eq, %arg0, %c7_i32 : i32
    %9 = arith.extui %8 : i1 to i32
    %c0_i32_4 = arith.constant 0 : i32
    %10 = arith.cmpi ne, %9, %c0_i32_4 : i32
    scf.if %10 {
      %c0_5 = arith.constant 0 : index
      %c0_6 = arith.constant 0 : index
      %11 = vector.load %arg11[%c0_5, %c0_6] : memref<8x128xf32, #tpu.memory_space<vmem>>, vector<8x128xf32>
      %12 = arith.truncf %11 : vector<8x128xf32> to vector<8x128xbf16>
      %c0_7 = arith.constant 0 : index
      %c0_8 = arith.constant 0 : index
      %13 = vector.load %arg12[%c0_7, %c0_8] : memref<8x128xf32, #tpu.memory_space<vmem>>, vector<8x128xf32>
      %14 = arith.truncf %13 : vector<8x128xf32> to vector<8x128xbf16>
      %cst = arith.constant dense<0.000000e+00> : vector<8x8xf32>
      %15 = tpu.matmul %12, %14, %cst {dimension_numbers = #tpu.dot_dimension_numbers<[1], [1], [0], [0], [0, 0, 1, 0], [], []>} : vector<8x128xbf16>, vector<8x128xbf16>, vector<8x8xf32> -> vector<8x8xf32>
      %c0_9 = arith.constant 0 : index
      %c0_10 = arith.constant 0 : index
      %16 = vector.load %arg8[%c0_9, %c0_10] : memref<1x8xf32, #tpu.memory_space<vmem>>, vector<1x8xf32>
      %17 = vector.broadcast %16 : vector<1x8xf32> to vector<8x8xf32>
      %18 = arith.addf %15, %17 : vector<8x8xf32>
      %19 = math.tanh %18 : vector<8x8xf32>
      %c0_11 = arith.constant 0 : index
      %c0_12 = arith.constant 0 : index
      %20 = vector.load %arg9[%c0_11, %c0_12] : memref<8x8xf32, #tpu.memory_space<vmem>>, vector<8x8xf32>
      tpu.vector_store %arg9[%c0_11, %c0_12], %19 {strides = array<i32>} : memref<8x8xf32, #tpu.memory_space<vmem>>, vector<8x8xf32>,
    } else {
    }
    return
  }
  func.func @transform_0(%arg0: i32, %arg1: memref<8xi32, #tpu.memory_space<smem>>) -> (i32, i32) {
    %c0_i32 = arith.constant 0 : i32
    %c0_i32_0 = arith.constant 0 : i32
    %c0_i32_1 = arith.constant 0 : i32
    return %c0_i32, %c0_i32_0 : i32, i32
  }
  func.func @transform_1(%arg0: i32, %arg1: memref<8xi32, #tpu.memory_space<smem>>) -> (i32, i32) {
    %c0_i32 = arith.constant 0 : i32
    %c0_i32_0 = arith.constant 0 : i32
    %c0_i32_1 = arith.constant 0 : i32
    return %c0_i32, %c0_i32_0 : i32, i32
  }
  func.func @transform_2(%arg0: i32, %arg1: memref<8xi32, #tpu.memory_space<smem>>) -> (i32, i32) {
    %c0_i32 = arith.constant 0 : i32
    %c0_i32_0 = arith.constant 0 : i32
    %c0_i32_1 = arith.constant 0 : i32
    return %c0_i32, %c0_i32_0 : i32, i32
  }
  func.func @transform_3(%arg0: i32, %arg1: memref<8xi32, #tpu.memory_space<smem>>) -> (i32, i32) {
    %c0_i32 = arith.constant 0 : i32
    %c0_i32_0 = arith.constant 0 : i32
    %c0_i32_1 = arith.constant 0 : i32
    return %c0_i32, %c0_i32_0 : i32, i32
  }
  func.func @transform_4(%arg0: i32, %arg1: memref<8xi32, #tpu.memory_space<smem>>) -> (i32, i32) {
    %c0_i32 = arith.constant 0 : i32
    %c0_i32_0 = arith.constant 0 : i32
    %c0_i32_1 = arith.constant 0 : i32
    return %c0_i32, %c0_i32_0 : i32, i32
  }
  func.func @transform_5(%arg0: i32, %arg1: memref<8xi32, #tpu.memory_space<smem>>) -> (i32, i32, i32) {
    %0 = arith.index_cast %arg0 : i32 to index
    %1 = memref.load %arg1[%0] : memref<8xi32, #tpu.memory_space<smem>>
    %c0_i32 = arith.constant 0 : i32
    %c0_i32_0 = arith.constant 0 : i32
    %c0_i32_1 = arith.constant 0 : i32
    return %1, %c0_i32, %c0_i32_0 : i32, i32, i32
  }
  func.func @transform_6(%arg0: i32, %arg1: memref<8xi32, #tpu.memory_space<smem>>) -> (i32, i32) {
    %c0_i32 = arith.constant 0 : i32
    %c0_i32_0 = arith.constant 0 : i32
    %c0_i32_1 = arith.constant 0 : i32
    return %c0_i32, %c0_i32_0 : i32, i32
  }
  func.func @transform_7(%arg0: i32, %arg1: memref<8xi32, #tpu.memory_space<smem>>) -> (i32, i32) {
    %c0_i32 = arith.constant 0 : i32
    %c0_i32_0 = arith.constant 0 : i32
    %c0_i32_1 = arith.constant 0 : i32
    return %c0_i32, %c0_i32_0 : i32, i32
  }
  func.func @transform_8(%arg0: i32, %arg1: memref<8xi32, #tpu.memory_space<smem>>) -> (i32, i32) {
    %c0_i32 = arith.constant 0 : i32
    %c0_i32_0 = arith.constant 0 : i32
    %c0_i32_1 = arith.constant 0 : i32
    return %c0_i32, %c0_i32_0 : i32, i32
  }
}

</mosaic_0001>

<bundles_post_ra>
// kernel: gru4rec_forward.1
= control target key start
LH: loop header
LB: loop body
LE: loop exit
PB: predicated region body
PF: predicated region fallthrough
CT: control target
= control target key end

     0   :  { %s1604_s0 = inlined_call_operand.vmem [shape: s32[8], index: 0, kind: input, shape index: {}]   ;;  %s1605_s1 = inlined_call_operand.vmem [shape: f32[8,128], index: 1, kind: input, shape index: {}]   ;;  %s1606_s2 = inlined_call_operand.vmem [shape: f32[8,1], index: 2, kind: input, shape index: {}]   ;;  %s1607_s3 = inlined_call_operand.vmem [shape: f32[8,128], index: 3, kind: input, shape index: {}]   ;;  %s1608_s4 = inlined_call_operand.vmem [shape: bf16[256,512], index: 4, kind: input, shape index: {}]   ;;  %s1609_s5 = inlined_call_operand.vmem [shape: f32[1,512], index: 5, kind: input, shape index: {}]   ;;  %s1610_s6 = inlined_call_operand.vmem [shape: bf16[512,1,128], index: 6, kind: input, shape index: {}]   ;;  %s1611_s7 = inlined_call_operand.vmem [shape: f32[1,8], index: 7, kind: input, shape index: {}]   ;;  %s1612_s8 = inlined_call_operand.hbm [shape: f32[8,8], index: 8, kind: output, shape index: {0}]   ;;  %s1613_s9 = inlined_call_operand.hbm [shape: f32[8,128], index: 9, kind: output, shape index: {1}]  }
   0x1   :  { %s15_s11 = sshll.u32 %s1604_s0, 4  ;;  %s16_s11 = int_to_ptr.vmem [resolvable:$true] %s15_s11 }
   0x2   :  { %s1178_s12 = scalar_lea.vmem %s16_s11, 16  ;;  %p1183_p1 = scmp.lt.s32.totalorder %s16_s11, %s16_s11 }
   0x3   :  { %p1179_p0 = scmp.ne.s32.totalorder %s16_s11, %s1178_s12  ;;  %p1184_p2 = scmp.lt.s32.totalorder %s1178_s12, %s1178_s12 }
   0x5   :  { %p1185_p3 = por %p1184_p2, %p1183_p1 }
   0x7   :  { %p1186_p4 = pnand %p1185_p3, %p1179_p0 }
   0x9   :  { %1189 = shalt.err (!%p1186_p4)  }
   0xa   :  { %s1260_s13 = smov [#allocation5]  }
   0xb   :  { %18 = dma.vmem_to_smem %s16_s11, 16, %s1260_s13, [#allocation4] }
   0xc   :  { %1246 = dma.done.wait [#allocation4], 16 }
   0xd   :  { %1247 = vsyncadd [#allocation4], 4294967280 }
   0xe   :  { %20 = sfence }
   0xf   :  { %21 = vsyncpa [#allocation7], 0 }
  0x10   :  { %22 = vsyncpa [#allocation9], 0  ;;  %s1319_s14 = smov 0  }
  0x11 LB: > { %s1325_s0 = sadd.s32 4294967295, %s1258_s14   ;;  %p955_p5 = scmp.ge.s32.totalorder %s1258_s14, 1  ;;  %s1258_s14 = sphi %s1319_s14, %s28_s14  }
  0x12   : > { %p266_p6 = scmp.lt.s32.totalorder %s1258_s14, 9 }
  0x14   : > { %p267_p7 = pnand %p955_p5, %p266_p6 }
  0x15   : > { %s294_s15 = sld [smem:[#allocation5 + %s1325_s0]] (!%p267_p7)  ;;  %p956_p9 = scmp.ne.s32.totalorder (!%p267_p7), %s1325_s0, 0 }
  0x16   : > { %270 = sbr.rel (%p267_p7) target bundleno = 718 (0x2ce), region = 48 }
  0x1b   : > { %p295_p8 = scmp.lt.s32.totalorder (!%p267_p7), %s294_s15, 511 }
  0x1d   : > { %s1615_s15 = smov (!%p295_p8, %s294_s15), 511  ;;  %303 = sbr.rel (%p956_p9) target bundleno = 424 (0x1a8), region = 52 }
  0x1e   : > { %s297_s18 = scalar_lea.vmem %s1610_s6, %s1615_s15  ;;  %v305_v0 = vld [vmem:[%s1606_s2] sm:$0xff] (!%p956_p9)  ;;  %v1261_v1 = vmov (!%p956_p9), 0   ;;  %v1072_v3 = vld [vmem:[%s1608_s4 + $0xc] ss:$16 sps:$4 sm:$0xff] (!%p956_p9)   ;;  %v1075_v5 = vld [vmem:[%s1608_s4 + $0x8] ss:$16 sps:$4 sm:$0xff] (!%p956_p9)  }
  0x1f   : > { %1069 = vset.pattern.permute.xlu0 (!%p956_p9), %v1261_v1  ;;  %v1070_v2 = vld [vmem:[%s1608_s4 + $0x4] ss:$16 sps:$4 sm:$0xff] (!%p956_p9)   ;;  %v1074_v4 = vld [vmem:[%s1608_s4] ss:$16 sps:$4 sm:$0xff] (!%p956_p9)   ;;  %762 = vmatprep.subr.bf16.mxu1 (!%p956_p9), %v1072_v3  ;;  %v1078_v7 = vld [vmem:[%s1608_s4 + $0x2c] ss:$16 sps:$4 sm:$0xff] (!%p956_p9)  }
  0x20   : > { %308 = vperm.xlu0 (!%p956_p9), %1069, %v305_v0   ;;  %721 = vmatprep.subr.bf16.mxu0 (!%p956_p9), %v1070_v2  ;;  %v1076_v6 = vld [vmem:[%s1608_s4 + $0x24] ss:$16 sps:$4 sm:$0xff] (!%p956_p9)   ;;  %v1080_v8 = vld [vmem:[%s1608_s4 + $0x20] ss:$16 sps:$4 sm:$0xff] (!%p956_p9)   ;;  %v1081_v9 = vld [vmem:[%s1608_s4 + $0x28] ss:$16 sps:$4 sm:$0xff] (!%p956_p9)  }
  0x21   : > { %722 = vmatpush1.bf16.msra.mxu0 (!%p956_p9), %v1074_v4  ;;  %763 = vmatpush1.bf16.msra.mxu1 (!%p956_p9), %v1075_v5  ;;  %v1082_v10 = vld [vmem:[%s1608_s4 + $0x44] ss:$16 sps:$4 sm:$0xff] (!%p956_p9)   ;;  %v1084_v11 = vld [vmem:[%s1608_s4 + $0x4c] ss:$16 sps:$4 sm:$0xff] (!%p956_p9)   ;;  %v1086_v12 = vld [vmem:[%s1608_s4 + $0x40] ss:$16 sps:$4 sm:$0xff] (!%p956_p9)  }
  0x22   : > { %723 = vmatprep.subr.bf16.mxu0 (!%p956_p9), %v1076_v6  ;;  %764 = vmatprep.subr.bf16.mxu1 (!%p956_p9), %v1078_v7  ;;  %v1087_v13 = vld [vmem:[%s1608_s4 + $0x48] ss:$16 sps:$4 sm:$0xff] (!%p956_p9)   ;;  %v1088_v14 = vld [vmem:[%s1608_s4 + $0x64] ss:$16 sps:$4 sm:$0xff] (!%p956_p9)   ;;  %v1090_v15 = vld [vmem:[%s1608_s4 + $0x6c] ss:$16 sps:$4 sm:$0xff] (!%p956_p9)  }
  0x23   : > { %v1092_v16 = vld [vmem:[%s1608_s4 + $0x60] ss:$16 sps:$4 sm:$0xff] (!%p956_p9)   ;;  %v1093_v17 = vld [vmem:[%s1608_s4 + $0x68] ss:$16 sps:$4 sm:$0xff] (!%p956_p9)   ;;  %v1094_v18 = vld [vmem:[%s1608_s4 + $0x84] ss:$16 sps:$4 sm:$0xff] (!%p956_p9)  }
  0x24   : > { %v1096_v19 = vld [vmem:[%s1608_s4 + $0x8c] ss:$16 sps:$4 sm:$0xff]   ;;  %v1098_v20 = vld [vmem:[%s1608_s4 + $0x80] ss:$16 sps:$4 sm:$0xff]   ;;  %v1099_v21 = vld [vmem:[%s1608_s4 + $0x88] ss:$16 sps:$4 sm:$0xff]  }
  0x25   : > { %724 = vmatpush1.bf16.msra.mxu0 %v1080_v8  ;;  %765 = vmatpush1.bf16.msra.mxu1 %v1081_v9  ;;  %v1100_v22 = vld [vmem:[%s1608_s4 + $0xa4] ss:$16 sps:$4 sm:$0xff]   ;;  %v1102_v23 = vld [vmem:[%s1608_s4 + $0xac] ss:$16 sps:$4 sm:$0xff]   ;;  %v1104_v24 = vld [vmem:[%s1608_s4 + $0xa0] ss:$16 sps:$4 sm:$0xff]   ;;  %v381_v8 = vlaneseq }
  0x26   : > { %725 = vmatprep.subr.bf16.mxu0 %v1082_v10  ;;  %766 = vmatprep.subr.bf16.mxu1 %v1084_v11  ;;  %v1105_v25 = vld [vmem:[%s1608_s4 + $0xa8] ss:$16 sps:$4 sm:$0xff]   ;;  %v1106_v26 = vld [vmem:[%s1608_s4 + $0xc4] ss:$16 sps:$4 sm:$0xff]   ;;  %v1108_v27 = vld [vmem:[%s1608_s4 + $0xcc] ss:$16 sps:$4 sm:$0xff]  }
  0x27   : > { %v1110_v28 = vld [vmem:[%s1608_s4 + $0xc0] ss:$16 sps:$4 sm:$0xff]   ;;  %v1111_v29 = vld [vmem:[%s1608_s4 + $0xc8] ss:$16 sps:$4 sm:$0xff]   ;;  %v1112_v30 = vld [vmem:[%s1608_s4 + $0xe4] ss:$16 sps:$4 sm:$0xff]  }
  0x28   : > { %v1114_v31 = vld [vmem:[%s1608_s4 + $0xec] ss:$16 sps:$4 sm:$0xff]   ;;  %v1116_v32 = vld [vmem:[%s1608_s4 + $0xe0] ss:$16 sps:$4 sm:$0xff]   ;;  %v1117_v33 = vld [vmem:[%s1608_s4 + $0xe8] ss:$16 sps:$4 sm:$0xff]  }
  0x29   : > { %726 = vmatpush1.bf16.msra.mxu0 %v1086_v12  ;;  %767 = vmatpush1.bf16.msra.mxu1 %v1087_v13  ;;  %v1118_v34 = vld [vmem:[%s1608_s4 + $0x104] ss:$16 sps:$4 sm:$0xff]   ;;  %v1120_v35 = vld [vmem:[%s1608_s4 + $0x10c] ss:$16 sps:$4 sm:$0xff]   ;;  %v1122_v36 = vld [vmem:[%s1608_s4 + $0x100] ss:$16 sps:$4 sm:$0xff]  }
  0x2a   : > { %727 = vmatprep.subr.bf16.mxu0 %v1088_v14  ;;  %768 = vmatprep.subr.bf16.mxu1 %v1090_v15  ;;  %v1123_v37 = vld [vmem:[%s1608_s4 + $0x108] ss:$16 sps:$4 sm:$0xff]   ;;  %v1124_v38 = vld [vmem:[%s1608_s4 + $0x124] ss:$16 sps:$4 sm:$0xff]   ;;  %v1126_v39 = vld [vmem:[%s1608_s4 + $0x12c] ss:$16 sps:$4 sm:$0xff]  }
  0x2b   : > { %v1128_v40 = vld [vmem:[%s1608_s4 + $0x120] ss:$16 sps:$4 sm:$0xff]   ;;  %v1129_v41 = vld [vmem:[%s1608_s4 + $0x128] ss:$16 sps:$4 sm:$0xff]   ;;  %v1130_v42 = vld [vmem:[%s1608_s4 + $0x144] ss:$16 sps:$4 sm:$0xff]  }
  0x2c   : > { %v1132_v43 = vld [vmem:[%s1608_s4 + $0x14c] ss:$16 sps:$4 sm:$0xff]   ;;  %v1134_v44 = vld [vmem:[%s1608_s4 + $0x140] ss:$16 sps:$4 sm:$0xff]   ;;  %v1135_v45 = vld [vmem:[%s1608_s4 + $0x148] ss:$16 sps:$4 sm:$0xff]  }
  0x2d   : > { %728 = vmatpush1.bf16.msra.mxu0 %v1092_v16  ;;  %769 = vmatpush1.bf16.msra.mxu1 %v1093_v17  ;;  %v1136_v46 = vld [vmem:[%s1608_s4 + $0x164] ss:$16 sps:$4 sm:$0xff]   ;;  %v1138_v47 = vld [vmem:[%s1608_s4 + $0x16c] ss:$16 sps:$4 sm:$0xff]   ;;  %v1140_v49 = vld [vmem:[%s1608_s4 + $0x160] ss:$16 sps:$4 sm:$0xff]  }
  0x2e   : > { %729 = vmatprep.subr.bf16.mxu0 %v1094_v18  ;;  %770 = vmatprep.subr.bf16.mxu1 %v1096_v19  ;;  %v1481_v48 = vld [vmem:[%s1607_s3] sm:$0xff]  ;;  %v1141_v51 = vld [vmem:[%s1608_s4 + $0x168] ss:$16 sps:$4 sm:$0xff]   ;;  %v1144_v53 = vld [vmem:[%s1608_s4 + $0x18c] ss:$16 sps:$4 sm:$0xff]   ;;  %v382_v9 = vshrl.u32 %v381_v8, 7 }
  0x2f   : > { %v314_v50 = vpack.c.bf16 %v1481_v48, %v1481_v48  ;;  %v1142_v52 = vld [vmem:[%s1608_s4 + $0x184] ss:$16 sps:$4 sm:$0xff]   ;;  %v1146_v54 = vld [vmem:[%s1608_s4 + $0x180] ss:$16 sps:$4 sm:$0xff]   ;;  %v1147_v55 = vld [vmem:[%s1608_s4 + $0x188] ss:$16 sps:$4 sm:$0xff]  }
  0x30   : > { %v1148_v56 = vld [vmem:[%s1608_s4 + $0x1a4] ss:$16 sps:$4 sm:$0xff]   ;;  %v1150_v57 = vld [vmem:[%s1608_s4 + $0x1ac] ss:$16 sps:$4 sm:$0xff]   ;;  %v1152_v58 = vld [vmem:[%s1608_s4 + $0x1a0] ss:$16 sps:$4 sm:$0xff]  }
  0x31   : > { %730 = vmatpush1.bf16.msra.mxu0 %v1098_v20  ;;  %771 = vmatpush1.bf16.msra.mxu1 %v1099_v21  ;;  %v1153_v59 = vld [vmem:[%s1608_s4 + $0x1a8] ss:$16 sps:$4 sm:$0xff]   ;;  %v1154_v60 = vld [vmem:[%s1608_s4 + $0x1c4] ss:$16 sps:$4 sm:$0xff]   ;;  %v1156_v61 = vld [vmem:[%s1608_s4 + $0x1cc] ss:$16 sps:$4 sm:$0xff]  }
  0x32   : > { %731 = vmatprep.subr.bf16.mxu0 %v1100_v22  ;;  %772 = vmatprep.subr.bf16.mxu1 %v1102_v23  ;;  %v1158_v62 = vld [vmem:[%s1608_s4 + $0x1c0] ss:$16 sps:$4 sm:$0xff]   ;;  %v1159_v63 = vld [vmem:[%s1608_s4 + $0x1c8] ss:$16 sps:$4 sm:$0xff]   ;;  %v1160_v0 = vld [vmem:[%s1608_s4 + $0x1e4] ss:$16 sps:$4 sm:$0xff]  }
  0x33   : > { %753 = vmatprep.mubr.bf16.mxu0 %v314_v50  ;;  %794 = vmatprep.mubr.bf16.mxu1 %v314_v50  ;;  %v1162_v1 = vld [vmem:[%s1608_s4 + $0x1ec] ss:$16 sps:$4 sm:$0xff]   ;;  %v1164_v2 = vld [vmem:[%s1608_s4 + $0x1e0] ss:$16 sps:$4 sm:$0xff]   ;;  %v1165_v3 = vld [vmem:[%s1608_s4 + $0x1e8] ss:$16 sps:$4 sm:$0xff]  }
  0x34   : > { %v304_v4 = vld [vmem:[%s1605_s1] sm:$0xff]  ;;  %v383_v10 = vsub.s32 0, %v382_v9  ;;  %v387_v12 = vsub.s32 1, %v382_v9 }
  0x35   : > { %732 = vmatpush1.bf16.msra.mxu0 %v1104_v24  ;;  %773 = vmatpush1.bf16.msra.mxu1 %v1105_v25  ;;  %v379_v11 = vld [vmem:[%s1609_s5] sm:$0xf] }
  0x36   : > { %733 = vmatprep.subr.bf16.mxu0 %v1106_v26  ;;  %774 = vmatprep.subr.bf16.mxu1 %v1108_v27  ;;  %v384_v13 = vrot.slane %v379_v11, %v383_v10  ;;  %v388_v16 = vrot.slane %v379_v11, %v387_v12 }
  0x39   : > { %734 = vmatpush1.bf16.msra.mxu0 %v1110_v28  ;;  %775 = vmatpush1.bf16.msra.mxu1 %v1111_v29  ;;  %v395_v29 = vsub.s32 3, %v382_v9 }
  0x3a   : > { %735 = vmatprep.subr.bf16.mxu0 %v1112_v30  ;;  %776 = vmatprep.subr.bf16.mxu1 %v1114_v31  ;;  %v391_v30 = vsub.s32 2, %v382_v9 }
  0x3d   : > { %736 = vmatpush1.bf16.msra.mxu0 %v1116_v32  ;;  %777 = vmatpush1.bf16.msra.mxu1 %v1117_v33  ;;  %v396_v32 = vrot.slane %v379_v11, %v395_v29  ;;  %v392_v33 = vrot.slane %v379_v11, %v391_v30 }
  0x3e   : > { %737 = vmatprep.subr.bf16.mxu0 %v1118_v34  ;;  %778 = vmatprep.subr.bf16.mxu1 %v1120_v35 }
  0x41   : > { %738 = vmatpush1.bf16.msra.mxu0 %v1122_v36  ;;  %779 = vmatpush1.bf16.msra.mxu1 %v1123_v37 }
  0x42   : > { %739 = vmatprep.subr.bf16.mxu0 %v1124_v38  ;;  %780 = vmatprep.subr.bf16.mxu1 %v1126_v39 }
  0x45   : > { %740 = vmatpush1.bf16.msra.mxu0 %v1128_v40  ;;  %781 = vmatpush1.bf16.msra.mxu1 %v1129_v41 }
  0x46   : > { %741 = vmatprep.subr.bf16.mxu0 %v1130_v42  ;;  %782 = vmatprep.subr.bf16.mxu1 %v1132_v43 }
  0x49   : > { %742 = vmatpush1.bf16.msra.mxu0 %v1134_v44  ;;  %783 = vmatpush1.bf16.msra.mxu1 %v1135_v45 }
  0x4a   : > { %743 = vmatprep.subr.bf16.mxu0 %v1136_v46  ;;  %784 = vmatprep.subr.bf16.mxu1 %v1138_v47 }
  0x4d   : > { %744 = vmatpush1.bf16.msra.mxu0 %v1140_v49  ;;  %785 = vmatpush1.bf16.msra.mxu1 %v1141_v51 }
  0x4e   : > { %745 = vmatprep.subr.bf16.mxu0 %v1142_v52  ;;  %786 = vmatprep.subr.bf16.mxu1 %v1144_v53 }
  0x51   : > { %746 = vmatpush1.bf16.msra.mxu0 %v1146_v54  ;;  %787 = vmatpush1.bf16.msra.mxu1 %v1147_v55 }
  0x52   : > { %747 = vmatprep.subr.bf16.mxu0 %v1148_v56  ;;  %788 = vmatprep.subr.bf16.mxu1 %v1150_v57 }
  0x55   : > { %748 = vmatpush1.bf16.msra.mxu0 %v1152_v58  ;;  %789 = vmatpush1.bf16.msra.mxu1 %v1153_v59 }
  0x56   : > { %749 = vmatprep.subr.bf16.mxu0 %v1154_v60  ;;  %790 = vmatprep.subr.bf16.mxu1 %v1156_v61 }
  0x59   : > { %750 = vmatpush1.bf16.msra.mxu0 %v1158_v62  ;;  %791 = vmatpush1.bf16.msra.mxu1 %v1159_v63 }
  0x5a   : > { %751 = vmatprep.subr.bf16.mxu0 %v1160_v0  ;;  %792 = vmatprep.subr.bf16.mxu1 %v1162_v1 }
  0x5d   : > { %752 = vmatpush1.bf16.msra.mxu0 %v1164_v2  ;;  %793 = vmatpush1.bf16.msra.mxu1 %v1165_v3 }
  0x9f   : > { %v309_v5 = vpop.permute.xlu0 %308 }
  0xa0   : > { %v311_v6 = vmul.f32 %v309_v5, %v304_v4 }
  0xa2   : > { %v313_v7 = vpack.c.bf16 %v311_v6, %v311_v6 }
  0xa4   : > { %754 = vmatmul.mubr.bf16.vlgmr.msra.gmra.mrb[0].mxu0 %v313_v7  ;;  %795 = vmatmul.mubr.bf16.vlgmr.msra.gmra.mrb[0].mxu1 %v313_v7 }
 0x177   : > { %v755_v14 = vpop.f32.mrb[0].mxu0  ;;  %v796_v15 = vpop.f32.mrb[0].mxu1 }
 0x178   : > { %v756_v17 = vadd.f32 %v755_v14, %v384_v13  ;;  %v757_v18 = vpop.f32.mrb[1].mxu0  ;;  %v798_v19 = vpop.f32.mrb[1].mxu1  ;;  %v797_v37 = vadd.f32 %v796_v15, %v392_v33 }
 0x179   : > { %v759_v20 = vpop.f32.mrb[2].mxu0  ;;  %v800_v21 = vpop.f32.mrb[2].mxu1  ;;  %v758_v25 = vadd.f32 %v757_v18, %v388_v16  ;;  %v799_v35 = vadd.f32 %v798_v19, %v396_v32 }
 0x17a   : > { %v1021_v22 = vmul.f32 -1.442695, %v756_v17  ;;  %v760_v23 = vpop.f32.mrb[3].mxu0  ;;  %v801_v24 = vpop.f32.mrb[3].mxu1 }
 0x17b   : > { %v1022_v26 = vmul.f32 -1.442695, %v758_v25 }
 0x17c   : > { %1166 = vpow2.f32 %v1021_v22 }
 0x17d   : > { %1168 = vpow2.f32 %v1022_v26 }
 0x186   : > { %v1167_v27 = vpop.eup %1166 }
 0x187   : > { %v806_v28 = vadd.f32 1.0, %v1167_v27  ;;  %v1169_v31 = vpop.eup %1168 }
 0x188   : > { %v812_v34 = vadd.f32 1.0, %v1169_v31 }
 0x189   : > { %1170 = vrcp.f32 %v806_v28 }
 0x18a   : > { %1172 = vrcp.f32 %v812_v34 }
 0x193   : > { %v1171_v36 = vpop.eup %1170 }
 0x194   : > { %v815_v38 = vmul.f32 %v1171_v36, %v799_v35  ;;  %v1173_v40 = vpop.eup %1172 }
 0x195   : > { %v818_v41 = vsub.f32 1.0, %v1173_v40  ;;  %v820_v43 = vmul.f32 %v1173_v40, %v1481_v48 }
 0x196   : > { %v816_v39 = vadd.f32 %v815_v38, %v797_v37 }
 0x198   : > { %1174 = vtanh.f32 %v816_v39 }
 0x1a2   : > { %v1175_v42 = vpop.eup %1174 }
 0x1a3   : > { %v819_v44 = vmul.f32 %v1175_v42, %v818_v41 }
 0x1a5   : > { %v821_v45 = vadd.f32 %v820_v43, %v819_v44 }
 0x1a7   : > { %822 = vst [vmem:[#allocation2] sm:$0xff] %v821_v45  ;;  %823 = vst [vmem:[#allocation8] sm:$0xff] %v821_v45 }
 0x1a8 PF: > { %v824_v46 = vld [vmem:[%s297_s18] sm:$0x1]  ;;  %s1032_s10 = scalar_lea.vmem [#allocation3], %s1258_s14  ;;  %p1024_p10 = scmp.ne.s32.totalorder %s1325_s0, 7 }
 0x1a9   : > { %v825_v47 = vunpack.c.l.bf16 %v824_v46  ;;  %v1262_v48 = vmov (!%p1024_p10), 0.0   ;;  %vm1263_vm0 = vmmov (!%p1024_p10), 0   ;;  %v1025_v53 = vld [vmem:[%s1611_s7] ss:$0 sm:$0xff] (!%p1024_p10)  ;;  %vm884_vm1 = vcmask (!%p1024_p10), 64512  }
 0x1aa   : > { %831 = sbr.rel (%p1024_p10) target bundleno = 670 (0x29e), region = 56  ;;  %1037 = vmatprep.subr.bf16.mxu0 (!%p1024_p10), %v1262_v48  ;;  %1039 = vmatprep.mubr.msk.bf16.mxu0 (!%p1024_p10), %vm1263_vm0, %v1262_v48 }
 0x1ab   : > { %1034 = vst [vmem:[%s1032_s10 - $0x1] sm:$0x1] %v825_v47 }
 0x1ae   : > { %v832_v51 = vld [vmem:[#allocation2] sm:$0xff] (!%p1024_p10) }
 0x1af   : > { %v833_v52 = vpack.c.bf16 (!%p1024_p10), %v832_v51, %v832_v51 }
 0x1b2   : > { %v834_v49 = vld [vmem:[#allocation3] sm:$0xff] }
 0x1b3   : > { %v835_v50 = vpack.c.bf16 %v834_v49, %v834_v49 }
 0x1b5   : > { %1038 = vmatpush3.bf16.xpose.msra.mxu0 %v835_v50 }
 0x1bc   : > { %1040 = vmatmul.mubr.bf16.vlgmr.msra.gmra.mrb[0].mxu0 %v833_v52 }
 0x28f   : > { %v877_v54 = vpop.f32.mrb[0].mxu0 }
 0x290   : > { %v878_v55 = vadd.f32 %v1025_v53, %v877_v54  ;;  %v1041_v56 = vpop.f32.mrb[1].mxu0 }
 0x291   : > { %v880_v57 = vpop.f32.mrb[2].mxu0 }
 0x292   : > { %1176 = vtanh.f32 %v878_v55  ;;  %v1042_v58 = vpop.f32.mrb[3].mxu0 }
 0x29c   : > { %v1177_v59 = vpop.eup %1176 }
 0x29d   : > { %885 = vst.msk [vmem:[#allocation6] sm:$0xff] %vm884_vm1, %v1177_v59 }
 0x29e PF: > { %p1051_p11 = scmp.eq.s32.totalorder %s1325_s0, 7  ;;  %s1264_s18 = smov [#allocation6]  }
 0x29f   : > { %s893_s12 = sshll.u32 %s1264_s18, 4  ;;  %s1265_s13 = smov [#allocation8]   ;;  %s894_s12 = int_to_ptr.vmem [resolvable:$true] %s893_s12 }
 0x2a0   : > { %s904_s16 = sshll.u32 %s1265_s13, 4  ;;  %s1190_s17 = scalar_lea.vmem %s894_s12, 128  ;;  %s905_s16 = int_to_ptr.vmem [resolvable:$true] %s904_s16 }
 0x2a1   : > { %p1191_p12 = scmp.ne.s32.totalorder %s894_s12, %s1190_s17  ;;  %p1197_p1 = scmp.lt.s32.totalorder %s894_s12, %s894_s12 }
 0x2a2   : > { %p1198_p2 = scmp.lt.s32.totalorder %s1190_s17, %s1190_s17 }
 0x2a3   : > { %p1192_p13 = pnand %p1191_p12, %p1051_p11 }
 0x2a4   : > { %p1199_p3 = por %p1198_p2, %p1197_p1 }
 0x2a5   : > { %p1193_p0 = pneg %p1192_p13 }
 0x2a7   : > { %p1200_p4 = pnand %p1199_p3, %p1193_p0 }
 0x2a9   : > { %1203 = shalt.err (!%p1200_p4)
}
 0x2aa   : > { %s1204_s21 = scalar_lea.hbm %s1612_s8, 128 }
 0x2ab   : > { %p1205_p5 = scmp.ne.s32.totalorder %s1612_s8, %s1204_s21  ;;  %p1210_p8 = scmp.lt.u32.totalorder %s1204_s21, %s1612_s8 }
 0x2ad   : > { %p1206_p6 = pnand %p1205_p5, %p1051_p11 }
 0x2af   : > { %p1207_p7 = pneg %p1206_p6 }
 0x2b1   : > { %p1212_p9 = pnand %p1210_p8, %p1207_p7 }
 0x2b3   : > { %1215 = shalt.err (!%p1212_p9)
}
 0x2b4   : > { %1044 = dma.vmem_to_hbm [thread:$0]  (%p1051_p11), %s894_s12, 128, %s1612_s8, [#allocation7]  }
 0x2b5   : > { %s1216_s28 = scalar_lea.vmem %s905_s16, 128  ;;  %p1223_p0 = scmp.lt.s32.totalorder %s905_s16, %s905_s16 }
 0x2b6   : > { %p1217_p10 = scmp.ne.s32.totalorder %s905_s16, %s1216_s28  ;;  %p1224_p1 = scmp.lt.s32.totalorder %s1216_s28, %s1216_s28 }
 0x2b8   : > { %p1218_p12 = pnand %p1217_p10, %p1051_p11  ;;  %p1225_p2 = por %p1224_p1, %p1223_p0 }
 0x2ba   : > { %p1219_p13 = pneg %p1218_p12 }
 0x2bc   : > { %p1226_p3 = pnand %p1225_p2, %p1219_p13 }
 0x2be   : > { %1229 = shalt.err (!%p1226_p3)
}
 0x2bf   : > { %s1230_s10 = scalar_lea.hbm %s1613_s9, 128 }
 0x2c0   : > { %p1231_p4 = scmp.ne.s32.totalorder %s1613_s9, %s1230_s10  ;;  %p1236_p7 = scmp.lt.u32.totalorder %s1230_s10, %s1613_s9 }
 0x2c2   : > { %p1232_p5 = pnand %p1231_p4, %p1051_p11 }
 0x2c4   : > { %p1233_p6 = pneg %p1232_p5 }
 0x2c6   : > { %p1238_p8 = pnand %p1236_p7, %p1233_p6 }
 0x2c8   : > { %1241 = shalt.err (!%p1238_p8)
}
 0x2c9   : > { %1046 = dma.vmem_to_hbm [thread:$0]  (%p1051_p11), %s905_s16, 128, %s1613_s9, [#allocation9]  }
 0x2ca   : > { %1249 = dma.done.wait (%p1051_p11), [#allocation7], 128  }
 0x2cb   : > { %1251 = vsyncadd (%p1051_p11), [#allocation7], 4294967168 }
 0x2cc   : > { %1253 = dma.done.wait (%p1051_p11), [#allocation9], 128  }
 0x2cd   : > { %1255 = vsyncadd (%p1051_p11), [#allocation9], 4294967168 }
 0x2ce PF: > { %s28_s14 = sadd.s32 1, %s1258_s14  }
 0x2cf   : > { %p25_p9 = scmp.ge.s32.totalorder %s28_s14, 10  }
 0x2d1   :  { %27 = sbr.rel (!%p25_p9) target bundleno = 17 (0x11), region = 92 }
 0x2d8   :  { %921 = vsyncpa [#allocation7], 1 }
 0x2d9   :  { %923 = vsyncpa [#allocation7 + $0x1], 1 }
 0x2da   :  { %924 = vsyncpa [#allocation9], 1 }

</bundles_post_ra>
